<compile_context>
chip_gen: v5e
topology: v5e:2x2
jax: 0.10.0
libtpu: 0.0.40
codegen_flags: <defaults>
</compile_context>

<pallas_src>
import jax
import jax.numpy as jnp
from jax.experimental import pallas as pl
from jax.experimental.pallas import tpu as pltpu


def linear_sigmoid_kernel(params_ref, x_ref, o_ref):
    """params_ref: SMEM f32[4] = [w0, w1, w2, b]
    x_ref: VMEM (3, TB)  (features on sublanes, batch on lanes)
    o_ref: VMEM (1, TB)
    """
    x = x_ref[...].astype(jnp.float32)          # (3, TB), f32 math on the VPU
    w0 = params_ref[0]
    w1 = params_ref[1]
    w2 = params_ref[2]
    b = params_ref[3]
    # 3-MAC linear layer on the VPU (no MXU, no transpose).
    z = x[0:1, :] * w0 + x[1:2, :] * w1 + x[2:3, :] * w2 + b   # (1, TB)
    # sigmoid(z) == 0.5 * tanh(0.5 * z) + 0.5  -> single EUP op.
    o_ref[...] = (0.5 * jnp.tanh(0.5 * z) + 0.5).astype(o_ref.dtype)


def simple_nn_forward(x, weight, bias, *, tb=512):
    """Forward pass of SimpleNN: sigmoid(x @ W^T + b).

    x: (B, 3), weight: (1, 3) (PyTorch convention), bias: (1,). Returns (B, 1).
    """
    B, in_features = x.shape
    out_features = weight.shape[0]
    assert in_features == 3 and out_features == 1

    # Lane-dense layout: put the batch on the 128-lane axis and pad to the tile size.
    b_pad = pl.cdiv(B, tb) * tb
    x_t = jnp.pad(x.T, ((0, 0), (0, b_pad - B)))            # (3, B_pad)

    # Flat f32[4] parameter vector for SMEM scalar prefetch: [w0, w1, w2, b].
    params = jnp.concatenate(
        [weight.reshape(-1), bias.reshape(-1)]
    ).astype(jnp.float32)

    out_t = pl.pallas_call(
        linear_sigmoid_kernel,
        out_shape=jax.ShapeDtypeStruct((out_features, b_pad), x.dtype),
        grid_spec=pltpu.PrefetchScalarGridSpec(
            num_scalar_prefetch=1,                           # params -> SMEM
            grid=(b_pad // tb,),
            in_specs=[
                pl.BlockSpec((in_features, tb), lambda i, params: (0, i)),
            ],
            out_specs=pl.BlockSpec((out_features, tb), lambda i, params: (0, i)),
        ),
        compiler_params=pltpu.CompilerParams(
            dimension_semantics=("parallel",),               # megacore split on v7x
        ),
    )(params, x_t)

    # (1, B_pad) -> drop padding -> (B, 1)
    return out_t[:, :B].T


def init_params(key):
    """Deterministic init matching nn.Linear(3, 1) shapes.

    PyTorch uses U(-1/sqrt(fan_in), 1/sqrt(fan_in)); we mimic that bound."""
    in_features, out_features = 3, 1
    kw, kb = jax.random.split(key)
    bound = 1.0 / jnp.sqrt(jnp.float32(in_features))
    weight = jax.random.uniform(
        kw, (out_features, in_features), jnp.float32, -bound, bound
    )
    bias = jax.random.uniform(kb, (out_features,), jnp.float32, -bound, bound)
    return weight, bias


if __name__ == "__main__":
    key = jax.random.PRNGKey(0)
    k_x, k_x2, k_p = jax.random.split(key, 3)

    weight, bias = init_params(k_p)

    # Small-shape check (B=8): single grid step, padded to one 512-lane tile.
    batch = 8
    x = jax.random.normal(k_x, (batch, 3), dtype=jnp.float32)
    out = jax.block_until_ready(simple_nn_forward(x, weight, bias))
    ref = jax.nn.sigmoid(x @ weight.T + bias[None, :])
    assert out.shape == (batch, 1)
    assert jnp.allclose(out, ref, atol=1e-5, rtol=1e-5)

    # Multi-tile check (B=1153, not a multiple of 128): exercises grid + pad slicing.
    batch2 = 1153
    x2 = jax.random.normal(k_x2, (batch2, 3), dtype=jnp.float32)
    out2 = jax.block_until_ready(simple_nn_forward(x2, weight, bias))
    ref2 = jax.nn.sigmoid(x2 @ weight.T + bias[None, :])
    assert out2.shape == (batch2, 1)
    assert jnp.allclose(out2, ref2, atol=1e-5, rtol=1e-5)

    print("KERNEL_OK")
</pallas_src>

<mosaic_0001>
module attributes {stable_mosaic.version = 11 : i64} {
  func.func @linear_sigmoid_kernel(%arg0: i32, %arg1: memref<4xf32, #tpu.memory_space<smem>>, %arg2: memref<3x512xf32, #tpu.memory_space<vmem>>, %arg3: memref<1x512xf32, #tpu.memory_space<vmem>>) attributes {dimension_semantics = [#tpu.dimension_semantics<parallel>], iteration_bounds = array<i64: 1>, scalar_prefetch = 1 : i64, scratch_operands = 0 : i64, tpu.core_type = #tpu.core_type<tc>, window_params = [{transform_indices = @transform_0, window_bounds = array<i64: 3, 512>}, {transform_indices = @transform_1, window_bounds = array<i64: 1, 512>}]} {
    %c0 = arith.constant 0 : index
    %c0_0 = arith.constant 0 : index
    %0 = vector.load %arg2[%c0, %c0_0] : memref<3x512xf32, #tpu.memory_space<vmem>>, vector<3x512xf32>
    %c0_1 = arith.constant 0 : index
    %1 = memref.load %arg1[%c0_1] : memref<4xf32, #tpu.memory_space<smem>>
    %c1 = arith.constant 1 : index
    %2 = memref.load %arg1[%c1] : memref<4xf32, #tpu.memory_space<smem>>
    %c2 = arith.constant 2 : index
    %3 = memref.load %arg1[%c2] : memref<4xf32, #tpu.memory_space<smem>>
    %c3 = arith.constant 3 : index
    %4 = memref.load %arg1[%c3] : memref<4xf32, #tpu.memory_space<smem>>
    %5 = vector.extract_strided_slice %0 {offsets = [0, 0], sizes = [1, 512], strides = [1, 1]} : vector<3x512xf32> to vector<1x512xf32>
    %6 = vector.broadcast %1 : f32 to vector<1x512xf32>
    %7 = arith.mulf %5, %6 : vector<1x512xf32>
    %8 = vector.extract_strided_slice %0 {offsets = [1, 0], sizes = [1, 512], strides = [1, 1]} : vector<3x512xf32> to vector<1x512xf32>
    %9 = vector.broadcast %2 : f32 to vector<1x512xf32>
    %10 = arith.mulf %8, %9 : vector<1x512xf32>
    %11 = arith.addf %7, %10 : vector<1x512xf32>
    %12 = vector.extract_strided_slice %0 {offsets = [2, 0], sizes = [1, 512], strides = [1, 1]} : vector<3x512xf32> to vector<1x512xf32>
    %13 = vector.broadcast %3 : f32 to vector<1x512xf32>
    %14 = arith.mulf %12, %13 : vector<1x512xf32>
    %15 = arith.addf %11, %14 : vector<1x512xf32>
    %16 = vector.broadcast %4 : f32 to vector<1x512xf32>
    %17 = arith.addf %15, %16 : vector<1x512xf32>
    %cst = arith.constant 5.000000e-01 : f32
    %18 = vector.broadcast %cst : f32 to vector<1x512xf32>
    %19 = arith.mulf %18, %17 : vector<1x512xf32>
    %20 = math.tanh %19 : vector<1x512xf32>
    %cst_2 = arith.constant 5.000000e-01 : f32
    %21 = vector.broadcast %cst_2 : f32 to vector<1x512xf32>
    %22 = arith.mulf %21, %20 : vector<1x512xf32>
    %cst_3 = arith.constant 5.000000e-01 : f32
    %23 = vector.broadcast %cst_3 : f32 to vector<1x512xf32>
    %24 = arith.addf %22, %23 : vector<1x512xf32>
    %c0_4 = arith.constant 0 : index
    %c0_5 = arith.constant 0 : index
    %25 = vector.load %arg3[%c0_4, %c0_5] : memref<1x512xf32, #tpu.memory_space<vmem>>, vector<1x512xf32>
    tpu.vector_store %arg3[%c0_4, %c0_5], %24 {strides = array<i32>} : memref<1x512xf32, #tpu.memory_space<vmem>>, vector<1x512xf32>,
    return
  }
  func.func @transform_0(%arg0: i32, %arg1: memref<4xf32, #tpu.memory_space<smem>>) -> (i32, i32) {
    %c0_i32 = arith.constant 0 : i32
    %c0_i32_0 = arith.constant 0 : i32
    return %c0_i32, %arg0 : i32, i32
  }
  func.func @transform_1(%arg0: i32, %arg1: memref<4xf32, #tpu.memory_space<smem>>) -> (i32, i32) {
    %c0_i32 = arith.constant 0 : i32
    %c0_i32_0 = arith.constant 0 : i32
    return %c0_i32, %arg0 : i32, i32
  }
}

</mosaic_0001>

<bundles_post_ra>
// kernel: tpu_custom_call.1
= control target key start
LH: loop header
LB: loop body
LE: loop exit
PB: predicated region body
PF: predicated region fallthrough
CT: control target
= control target key end

     0   :  { %s192_s12 = smov [#allocation3]   ;;  %s219_s0 = inlined_call_operand.hbm [shape: f32[4], index: 0, kind: input, shape index: {}]   ;;  %s220_s1 = inlined_call_operand.hbm [shape: f32[3,512], index: 1, kind: input, shape index: {}]   ;;  %s221_s2 = inlined_call_operand.hbm [shape: f32[1,512], index: 2, kind: output, shape index: {}]  }
   0x1   :  { %s8_s11 = sshll.u32 %s219_s0, 4  ;;  %s9_s11 = int_to_ptr.hbm [resolvable:$true] %s8_s11 }
   0x2   :  { %11 = dma.hbm_to_smem %s9_s11, 16, %s192_s12, [#allocation2] }
   0x3   :  { %186 = dma.done.wait [#allocation2], 16 }
   0x4   :  { %187 = vsyncadd [#allocation2], 4294967280 }
   0x5   :  { %14 = sfence }
   0x6   :  { %15 = vsyncpa [#allocation5], 0 }
   0x7   :  { %16 = vsyncpa [#allocation6], 0  ;;  %s22_s15 = sshll.u32 %s220_s1, 4  ;;  %s193_s16 = smov [#allocation4]   ;;  %s23_s15 = int_to_ptr.hbm [resolvable:$true] %s22_s15 }
   0x8   :  { %s24_s17 = sshll.u32 %s193_s16, 4  ;;  %s25_s17 = int_to_ptr.vmem [resolvable:$true] %s24_s17 }
   0x9   :  { %27 = dma.hbm_to_vmem [thread:$0]  %s23_s15, 256, %s25_s17, [#allocation5]  }
   0xa   :  { %188 = dma.done.wait [#allocation5], 256  }
   0xb   :  { %189 = vsyncadd [#allocation5], 4294967040  ;;  %s34_s0 = sld [smem:[#allocation3]]  ;;  %v32_v0 = vld [vmem:[#allocation4] sm:$0x77]  ;;  %v90_v29 = vlaneseq  ;;  %vm83_vm0 = vcmask 1040384  }
   0xc   :  { %s112_s18 = sld [smem:[#allocation3 + $0x1]]  ;;  %v33_v1 = vld [vmem:[#allocation4 + $0x8] sm:$0x77]  ;;  %vm85_vm1 = vcmask 1042434   ;;  %s194_s1 = smov [#allocation7]   ;;  %vm87_vm2 = vcmask 1041408  }
   0xd   :  { %s113_s19 = sld [smem:[#allocation3 + $0x2]]  ;;  %s100_s21 = sshll.u32 %s194_s1, 4  ;;  %vm92_vm3 = vcmp.lt.s32.totalorder %v90_v29, 512  ;;  %s101_s21 = int_to_ptr.vmem [resolvable:$true] %s100_s21 }
   0xe   :  { %s114_s20 = sld [smem:[#allocation3 + $0x3]]  ;;  %s102_s24 = sshll.u32 %s221_s2, 4  ;;  %s103_s24 = int_to_ptr.hbm [resolvable:$true] %s102_s24 }
  0x11   :  { %v38_v2 = vstv %s34_s0 }
  0x12   :  { %v40_v3 = vmul.f32 %v38_v2, %v33_v1  ;;  %v41_v4 = vstv %s112_s18  ;;  %v39_v8 = vmul.f32 %v38_v2, %v32_v0 }
  0x13   :  { %v42_v5 = vmul.f32 %v41_v4, %v32_v0  ;;  %v43_v6 = vmul.f32 %v41_v4, %v33_v1  ;;  %v54_v7 = vstv %s113_s19 }
  0x14   :  { %v56_v9 = vmul.f32 %v54_v7, %v33_v1  ;;  %v55_v10 = vmul.f32 %v54_v7, %v32_v0  ;;  %v67_v17 = vstv %s114_s20 }
  0x15   :  { %v116_v11 = vrot.slane %v43_v6, 9  ;;  %v115_v12 = vrot.slane %v42_v5, 9 }
  0x16   :  { %v117_v13 = vrot.slane %v55_v10, 10  ;;  %v118_v14 = vrot.slane %v56_v9, 10 }
  0x17   :  { %v52_v15 = vadd.f32 %v115_v12, %v39_v8  ;;  %v53_v16 = vadd.f32 %v116_v11, %v40_v3 }
  0x19   :  { %v65_v18 = vadd.f32 %v117_v13, %v52_v15  ;;  %v66_v19 = vadd.f32 %v118_v14, %v53_v16 }
  0x1b   :  { %v68_v20 = vadd.f32 %v67_v17, %v65_v18  ;;  %v69_v21 = vadd.f32 %v67_v17, %v66_v19 }
  0x1d   :  { %v70_v22 = vmul.f32 0.5, %v68_v20  ;;  %v71_v23 = vmul.f32 0.5, %v69_v21 }
  0x1f   :  { %122 = vtanh.f32 %v70_v22 }
  0x20   :  { %124 = vtanh.f32 %v71_v23 }
  0x25   :  { %v123_v24 = vpop.eup %122 }
  0x26   :  { %v125_v25 = vpop.eup %124  ;;  %v74_v26 = vmul.f32 0.5, %v123_v24 }
  0x27   :  { %v75_v27 = vmul.f32 0.5, %v125_v25 }
  0x28   :  { %v76_v28 = vadd.f32 0.5, %v74_v26 }
  0x29   :  { %v77_v30 = vadd.f32 0.5, %v75_v27 }
  0x2a   :  { %v80_v31 = vrot.slane %v76_v28, 3 }
  0x2b   :  { %v81_v32 = vrot.slane %v77_v30, 6  ;;  %v82_v33 = vrot.slane %v77_v30, 1 }
  0x2c   :  { %v84_v34 = vsel %vm83_vm0, %v76_v28, %v80_v31 }
  0x2d   :  { %v86_v35 = vsel %vm85_vm1, %v81_v32, %v82_v33 }
  0x2e   :  { %v88_v36 = vsel %vm87_vm2, %v84_v34, %v86_v35 }
  0x2f   :  { %94 = vst.msk [vmem:[#allocation7] sm:$0xf] %vm92_vm3, %v88_v36 }
  0x30   :  { %105 = dma.vmem_to_hbm [thread:$0]  %s101_s21, 64, %s103_s24, [#allocation6]  }
  0x31   :  { %190 = dma.done.wait [#allocation6], 64  }
  0x32   :  { %191 = vsyncadd [#allocation6], 4294967232 }
  0x33   :  { %110 = vsyncpa [#allocation5], 1 }
  0x34   :  { %111 = vsyncpa [#allocation6], 1 }

</bundles_post_ra>
